<compile_context>
chip_gen: v7x
topology: tpu7x:2x2x1
jax: 0.10.0
libtpu: 0.0.40
codegen_flags: <defaults>
</compile_context>

<pallas_src>
import math
import numpy as np
import jax
import jax.numpy as jnp
from jax.experimental import pallas as pl
from jax.experimental.pallas import tpu as pltpu

# ----------------------- config (small synthetic shapes) -----------------------
BSZ = 2
SRC_LEN = 8
SEQ_LEN = SRC_LEN + 1          # CLS prepended
EMBED_DIM = 128                # lane-dense: multiple of 128
HEADS = 4
BUCKET_SIZE = 16
NUM_REL_DIS = 2 * BUCKET_SIZE - 1
NUM_LAYERS = 1
VOCAB = 40
PADDING_IDX = 1
ALPHA = 0.5                    # cfg.shrink_alpha (forward value is exactly x; grad-only trick)
LN_EPS = 1e-5
IO_DTYPE = jnp.bfloat16        # bf16 I/O per perf review; LN math stays f32 in-kernel
MAX_SEQ_TILE = 512             # row-tile cap for real shapes (test shapes pad to 16)


def _round_up(x, m):
    return ((x + m - 1) // m) * m


# ----------------------- rp_bucket table (host-side, numpy) -----------------------
def make_token_bucket_position(bucket_size, max_position=1024):
    context_pos = np.arange(max_position, dtype=np.int64)[:, None]
    memory_pos = np.arange(max_position, dtype=np.int64)[None, :]
    relative_pos = context_pos - memory_pos
    sign = np.sign(relative_pos)
    mid = bucket_size // 2
    abs_pos = np.where((relative_pos < mid) & (relative_pos > -mid), mid - 1,
                       np.abs(relative_pos))
    log_pos = mid + np.ceil(
        np.log(abs_pos / mid) / math.log((max_position - 1) / mid) * (mid - 1)
    ).astype(np.int64)
    bucket_pos = np.where(abs_pos <= mid, relative_pos, log_pos * sign).astype(np.int64)
    return bucket_pos + bucket_size - 1


# ------------- Pallas kernel: one-pass LN + (beta+type) + pos, single store -------------
def _adapter_kernel(x_ref, pos_ref, gamma_ref, beta_ref, out_ref):
    # x_ref:   (batch_tile, seq_tile, D)  io dtype (contiguous cls+token embeddings)
    # pos_ref: (1, seq_tile, D)           io dtype, batch-invariant (resident across batch axis)
    # gamma_ref/beta_ref: (1, D) f32; beta already contains type_embedding folded in.
    x = x_ref[...].astype(jnp.float32)

    # one-pass LN statistics: var = E[x^2] - mean^2 (single reduce pass, no centered
    # tile kept live across a second XLU reduce).
    mean = jnp.mean(x, axis=-1, keepdims=True)
    mean_sq = jnp.mean(x * x, axis=-1, keepdims=True)
    var = mean_sq - mean * mean
    inv = jax.lax.rsqrt(var + LN_EPS)                       # EUP slot

    gamma = gamma_ref[...][None, :, :]                      # (1, 1, D)
    beta = beta_ref[...][None, :, :]                        # (1, 1, D)
    pos = pos_ref[...].astype(jnp.float32)                  # (1, seq_tile, D)

    y = (x - mean) * inv * gamma + beta + pos
    out_ref[...] = y.astype(out_ref.dtype)                  # single aligned full-block store


def text_adapter_fused(adapter_embed, pos_rows, ln_gamma2, beta_plus_type2,
                       *, seq_tile, batch_tile=1):
    """adapter_embed: (B, S_pad, D) io dtype (CLS row already at position 0);
    pos_rows: (1, S_pad, D) io dtype; ln_gamma2 / beta_plus_type2: (1, D) f32.
    Returns (B, S_pad, D) in adapter_embed.dtype."""
    bsz, seq_pad, d = adapter_embed.shape
    assert seq_pad % seq_tile == 0 and bsz % batch_tile == 0
    # batch is the INNER grid axis so pos/gamma/beta blocks (index_maps ignoring the
    # batch index) stay resident and are not re-DMA'd per batch tile.
    grid = (seq_pad // seq_tile, bsz // batch_tile)
    return pl.pallas_call(
        _adapter_kernel,
        out_shape=jax.ShapeDtypeStruct((bsz, seq_pad, d), adapter_embed.dtype),
        grid=grid,
        in_specs=[
            pl.BlockSpec((batch_tile, seq_tile, d), lambda s, b: (b, s, 0)),  # embeddings
            pl.BlockSpec((1, seq_tile, d), lambda s, b: (0, s, 0)),           # pos rows (batch-invariant)
            pl.BlockSpec((1, d), lambda s, b: (0, 0)),                        # LN gamma
            pl.BlockSpec((1, d), lambda s, b: (0, 0)),                        # LN beta + type_embedding
        ],
        out_specs=pl.BlockSpec((batch_tile, seq_tile, d), lambda s, b: (b, s, 0)),
        compiler_params=pltpu.CompilerParams(
            dimension_semantics=("parallel", "parallel")),   # independent row tiles; v7x 2nd TC usable
    )(adapter_embed, pos_rows, ln_gamma2, beta_plus_type2)


# ----------------------- parameter init (deterministic, synthetic) ---------------
def init_params(key):
    k1, k2, k3 = jax.random.split(key, 3)
    std = 0.02
    embed_tokens = jax.random.normal(k1, (VOCAB, EMBED_DIM), jnp.float32) * std
    embed_tokens = embed_tokens.at[PADDING_IDX].set(0.0)           # padding row zeroed
    embed_positions = jax.random.normal(k2, (512 + 2, EMBED_DIM), jnp.float32) * std
    cls_embedding = jax.random.normal(k3, (1, 1, EMBED_DIM), jnp.float32) * std
    type_embedding = jnp.zeros((EMBED_DIM,), jnp.float32)          # Parameter(zeros)
    ln_gamma = jnp.ones((EMBED_DIM,), jnp.float32)
    ln_beta = jnp.zeros((EMBED_DIM,), jnp.float32)
    # rel_pos_table(s): Embedding(num_rel_dis+3, heads, zero_init=True) -> zeros
    rel_pos_tables = [jnp.zeros((NUM_REL_DIS + 3, HEADS), jnp.float32)
                      for _ in range(NUM_LAYERS)]
    rp = make_token_bucket_position(BUCKET_SIZE, max_position=1024)
    rp[0, :] = NUM_REL_DIS
    rp[:, 0] = NUM_REL_DIS + 1
    rp[0, 0] = NUM_REL_DIS + 2
    rp_bucket = jnp.asarray(rp, dtype=jnp.int32)
    return dict(embed_tokens=embed_tokens, embed_positions=embed_positions,
                cls_embedding=cls_embedding, type_embedding=type_embedding,
                ln_gamma=ln_gamma, ln_beta=ln_beta,
                rel_pos_tables=rel_pos_tables, rp_bucket=rp_bucket)


# ----------------------- full forward (glue in JAX, hot path in Pallas) ----------
def text_adapter_forward(params, src_tokens, io_dtype=IO_DTYPE):
    bsz, src_len = src_tokens.shape
    seq_len = src_len + 1

    # padding mask: (B, S); first column False, rest = token == padding_idx
    padding_mask = jnp.concatenate(
        [jnp.zeros((bsz, 1), dtype=bool), src_tokens == PADDING_IDX], axis=1)

    # relative position bias list: (B, H, S, S) per layer (tables are zero-init)
    rp = params["rp_bucket"][:seq_len, :seq_len]
    self_attn_bias_list = []
    for w in params["rel_pos_tables"]:
        vals = jnp.take(w, rp, axis=0)                                      # (S, S, H)
        vals = jnp.broadcast_to(vals[None], (bsz, seq_len, seq_len, HEADS))
        self_attn_bias_list.append(jnp.transpose(vals, (0, 3, 1, 2)))

    # CLS as an extra embedding-table row + prepended index -> one contiguous gather,
    # so the kernel sees a single (B, S, D) slab and stores it in one aligned write.
    cls_index = params["embed_tokens"].shape[0]
    embed_ext = jnp.concatenate(
        [params["embed_tokens"], params["cls_embedding"].reshape(1, EMBED_DIM)], axis=0)
    full_tokens = jnp.concatenate(
        [jnp.full((bsz, 1), cls_index, dtype=src_tokens.dtype), src_tokens], axis=1)

    # pad seq to a sublane-/tile-aligned length; padded rows are sliced off at the end
    seq_tile = min(MAX_SEQ_TILE, _round_up(seq_len, 8))
    seq_pad = _round_up(seq_len, seq_tile)
    full_tokens = jnp.pad(full_tokens, ((0, 0), (0, seq_pad - seq_len)),
                          constant_values=PADDING_IDX)

    adapter_embed = jnp.take(embed_ext, full_tokens, axis=0).astype(io_dtype)  # (B, S_pad, D)

    # batch-invariant positional rows: (1, S_pad, D) — no (B,S,D) materialization.
    pos_table = params["embed_positions"]
    pos_rows = pos_table[:min(seq_pad, pos_table.shape[0])]
    if pos_rows.shape[0] < seq_pad:
        pos_rows = jnp.pad(pos_rows, ((0, seq_pad - pos_rows.shape[0]), (0, 0)))
    pos_rows = pos_rows[None, :, :].astype(io_dtype)

    # fold type_embedding into LN beta (exact: both broadcast identically over (B,S)).
    gamma2 = params["ln_gamma"].reshape(1, EMBED_DIM)
    beta_plus_type2 = (params["ln_beta"] + params["type_embedding"]).reshape(1, EMBED_DIM)

    x = text_adapter_fused(adapter_embed, pos_rows, gamma2, beta_plus_type2,
                           seq_tile=seq_tile, batch_tile=1)
    x = x[:, :seq_len, :]
    # dropout: identity at inference; shrink_alpha mix: exact forward identity, omitted.
    return x, padding_mask, self_attn_bias_list


# ----------------------- pure-JAX reference (original op order) -------------------
def _reference(params, src_tokens, io_dtype):
    bsz = src_tokens.shape[0]
    tok = jnp.take(params["embed_tokens"], src_tokens, axis=0)
    cls = jnp.broadcast_to(params["cls_embedding"], (bsz, 1, EMBED_DIM))
    adapter = jnp.concatenate([cls, tok], axis=1)
    # match the kernel's bf16 input precision, then compute in f32
    adapter = adapter.astype(io_dtype).astype(jnp.float32)
    mean = jnp.mean(adapter, axis=-1, keepdims=True)
    var = jnp.mean((adapter - mean) ** 2, axis=-1, keepdims=True)
    xn = (adapter - mean) * jax.lax.rsqrt(var + LN_EPS) * params["ln_gamma"] + params["ln_beta"]
    xn = xn * ALPHA + xn * (1.0 - ALPHA)       # identity, kept for spec fidelity
    pos = params["embed_positions"][:adapter.shape[1]][None, :, :]
    pos = pos.astype(io_dtype).astype(jnp.float32)
    return xn + pos + params["type_embedding"]


if __name__ == "__main__":
    key = jax.random.PRNGKey(0)
    pkey, tkey = jax.random.split(key)
    params = init_params(pkey)

    # deterministic tokens, with trailing padding in batch element 1
    src_tokens = jax.random.randint(tkey, (BSZ, SRC_LEN), 2, VOCAB, dtype=jnp.int32)
    src_tokens = src_tokens.at[1, -2:].set(PADDING_IDX)

    x, padding_mask, bias_list = text_adapter_forward(params, src_tokens)
    x = jax.block_until_ready(x)

    # correctness check against pure-JAX reference (bf16 I/O -> relaxed tolerance)
    ref = _reference(params, src_tokens, IO_DTYPE)
    np.testing.assert_allclose(np.asarray(x, dtype=np.float32), np.asarray(ref),
                               rtol=2e-2, atol=2e-2)

    assert x.shape == (BSZ, SEQ_LEN, EMBED_DIM)
    assert padding_mask.shape == (BSZ, SEQ_LEN)
    assert bias_list[0].shape == (BSZ, HEADS, SEQ_LEN, SEQ_LEN)
    print("KERNEL_OK")
</pallas_src>

<mosaic_0001>
module attributes {stable_mosaic.version = 11 : i64} {
  func.func @_adapter_kernel(%arg0: i32, %arg1: i32, %arg2: memref<1x16x128xbf16, #tpu.memory_space<vmem>>, %arg3: memref<1x16x128xbf16, #tpu.memory_space<vmem>>, %arg4: memref<1x128xf32, #tpu.memory_space<vmem>>, %arg5: memref<1x128xf32, #tpu.memory_space<vmem>>, %arg6: memref<1x16x128xbf16, #tpu.memory_space<vmem>>) attributes {dimension_semantics = [#tpu.dimension_semantics<parallel>, #tpu.dimension_semantics<parallel>], iteration_bounds = array<i64: 1, 2>, scalar_prefetch = 0 : i64, scratch_operands = 0 : i64, tpu.core_type = #tpu.core_type<tc>, window_params = [{transform_indices = @transform_0, window_bounds = array<i64: 1, 16, 128>}, {transform_indices = @transform_1, window_bounds = array<i64: 1, 16, 128>}, {pipeline_mode = #tpu.pipeline_mode<synchronous>, transform_indices = @transform_2, window_bounds = array<i64: 1, 128>}, {pipeline_mode = #tpu.pipeline_mode<synchronous>, transform_indices = @transform_3, window_bounds = array<i64: 1, 128>}, {transform_indices = @transform_4, window_bounds = array<i64: 1, 16, 128>}]} {
    %c0 = arith.constant 0 : index
    %c0_0 = arith.constant 0 : index
    %c0_1 = arith.constant 0 : index
    %0 = vector.load %arg2[%c0, %c0_0, %c0_1] : memref<1x16x128xbf16, #tpu.memory_space<vmem>>, vector<1x16x128xbf16>
    %1 = arith.extf %0 : vector<1x16x128xbf16> to vector<1x16x128xf32>
    %cst = arith.constant dense<0.000000e+00> : vector<1x16xf32>
    %2 = vector.multi_reduction <add>, %1, %cst [2] : vector<1x16x128xf32> to vector<1x16xf32>
    %3 = vector.shape_cast %2 : vector<1x16xf32> to vector<1x16x1xf32>
    %cst_2 = arith.constant 1.280000e+02 : f32
    %4 = vector.broadcast %cst_2 : f32 to vector<1x16x1xf32>
    %5 = arith.divf %3, %4 : vector<1x16x1xf32>
    %6 = arith.mulf %1, %1 : vector<1x16x128xf32>
    %cst_3 = arith.constant dense<0.000000e+00> : vector<1x16xf32>
    %7 = vector.multi_reduction <add>, %6, %cst_3 [2] : vector<1x16x128xf32> to vector<1x16xf32>
    %8 = vector.shape_cast %7 : vector<1x16xf32> to vector<1x16x1xf32>
    %cst_4 = arith.constant 1.280000e+02 : f32
    %9 = vector.broadcast %cst_4 : f32 to vector<1x16x1xf32>
    %10 = arith.divf %8, %9 : vector<1x16x1xf32>
    %11 = arith.mulf %5, %5 : vector<1x16x1xf32>
    %12 = arith.subf %10, %11 : vector<1x16x1xf32>
    %cst_5 = arith.constant 9.99999974E-6 : f32
    %13 = vector.broadcast %cst_5 : f32 to vector<1x16x1xf32>
    %14 = arith.addf %12, %13 : vector<1x16x1xf32>
    %15 = math.rsqrt %14 : vector<1x16x1xf32>
    %c0_6 = arith.constant 0 : index
    %c0_7 = arith.constant 0 : index
    %16 = vector.load %arg4[%c0_6, %c0_7] : memref<1x128xf32, #tpu.memory_space<vmem>>, vector<1x128xf32>
    %17 = vector.shape_cast %16 : vector<1x128xf32> to vector<1x1x128xf32>
    %c0_8 = arith.constant 0 : index
    %c0_9 = arith.constant 0 : index
    %18 = vector.load %arg5[%c0_8, %c0_9] : memref<1x128xf32, #tpu.memory_space<vmem>>, vector<1x128xf32>
    %19 = vector.shape_cast %18 : vector<1x128xf32> to vector<1x1x128xf32>
    %c0_10 = arith.constant 0 : index
    %c0_11 = arith.constant 0 : index
    %c0_12 = arith.constant 0 : index
    %20 = vector.load %arg3[%c0_10, %c0_11, %c0_12] : memref<1x16x128xbf16, #tpu.memory_space<vmem>>, vector<1x16x128xbf16>
    %21 = arith.extf %20 : vector<1x16x128xbf16> to vector<1x16x128xf32>
    %22 = vector.broadcast %5 : vector<1x16x1xf32> to vector<1x16x128xf32>
    %23 = arith.subf %1, %22 : vector<1x16x128xf32>
    %24 = vector.broadcast %15 : vector<1x16x1xf32> to vector<1x16x128xf32>
    %25 = arith.mulf %23, %24 : vector<1x16x128xf32>
    %26 = vector.broadcast %17 : vector<1x1x128xf32> to vector<1x16x128xf32>
    %27 = arith.mulf %25, %26 : vector<1x16x128xf32>
    %28 = vector.broadcast %19 : vector<1x1x128xf32> to vector<1x16x128xf32>
    %29 = arith.addf %27, %28 : vector<1x16x128xf32>
    %30 = arith.addf %29, %21 : vector<1x16x128xf32>
    %31 = arith.truncf %30 : vector<1x16x128xf32> to vector<1x16x128xbf16>
    %c0_13 = arith.constant 0 : index
    %c0_14 = arith.constant 0 : index
    %c0_15 = arith.constant 0 : index
    %32 = vector.load %arg6[%c0_13, %c0_14, %c0_15] : memref<1x16x128xbf16, #tpu.memory_space<vmem>>, vector<1x16x128xbf16>
    tpu.vector_store %arg6[%c0_13, %c0_14, %c0_15], %31 {strides = array<i32>} : memref<1x16x128xbf16, #tpu.memory_space<vmem>>, vector<1x16x128xbf16>,
    return
  }
  func.func @transform_0(%arg0: i32, %arg1: i32) -> (i32, i32, i32) {
    %c0_i32 = arith.constant 0 : i32
    %c0_i32_0 = arith.constant 0 : i32
    return %arg1, %arg0, %c0_i32 : i32, i32, i32
  }
  func.func @transform_1(%arg0: i32, %arg1: i32) -> (i32, i32, i32) {
    %c0_i32 = arith.constant 0 : i32
    %c0_i32_0 = arith.constant 0 : i32
    %c0_i32_1 = arith.constant 0 : i32
    return %c0_i32, %arg0, %c0_i32_0 : i32, i32, i32
  }
  func.func @transform_2(%arg0: i32, %arg1: i32) -> (i32, i32) {
    %c0_i32 = arith.constant 0 : i32
    %c0_i32_0 = arith.constant 0 : i32
    %c0_i32_1 = arith.constant 0 : i32
    return %c0_i32, %c0_i32_0 : i32, i32
  }
  func.func @transform_3(%arg0: i32, %arg1: i32) -> (i32, i32) {
    %c0_i32 = arith.constant 0 : i32
    %c0_i32_0 = arith.constant 0 : i32
    %c0_i32_1 = arith.constant 0 : i32
    return %c0_i32, %c0_i32_0 : i32, i32
  }
  func.func @transform_4(%arg0: i32, %arg1: i32) -> (i32, i32, i32) {
    %c0_i32 = arith.constant 0 : i32
    %c0_i32_0 = arith.constant 0 : i32
    return %arg1, %arg0, %c0_i32 : i32, i32, i32
  }
}

</mosaic_0001>

<bundles_post_ra>
// kernel: tpu_custom_call.1
= control target key start
LH: loop header
LB: loop body
LE: loop exit
PB: predicated region body
PF: predicated region fallthrough
CT: control target
= control target key end

     0   :  { %9 = vsyncpa [#allocation3], 0  ;;  %s972_s0 = inlined_call_operand.hbm [shape: bf16[2,16,128], index: 0, kind: input, shape index: {}]   ;;  %s973_s1 = inlined_call_operand.hbm [shape: bf16[1,16,128], index: 1, kind: input, shape index: {}]   ;;  %s974_s2 = inlined_call_operand.vmem [shape: f32[1,128], index: 2, kind: input, shape index: {}]   ;;  %s975_s3 = inlined_call_operand.vmem [shape: f32[1,128], index: 3, kind: input, shape index: {}]   ;;  %s976_s4 = inlined_call_operand.hbm [shape: bf16[2,16,128], index: 4, kind: output, shape index: {}]  }
   0x1   :  { %11 = vsyncpa [#allocation3 + $0x1], 0 }
   0x2   :  { %12 = vsyncpa [#allocation6], 0 }
   0x3   :  { %13 = vsyncpa [#allocation4], 0 }
   0x4   :  { %15 = vsyncpa [#allocation4 + $0x1], 0  ;;  %s737_s15 = smov 0   ;;  %s739_s16 = smov 0  }
   0x5   :  { %s741_s17 = smov 0   ;;  %s743_s18 = smov 0  }
   0x6   :  { %s745_s19 = smov 0   ;;  %s747_s20 = smov 0  }
   0x7 LB: > { %s440_s21 = sadd.s32 4294967295, %s703_s20   ;;  %s441_s22 = sadd.s32 4294967294, %s703_s20   ;;  %s703_s20 = sphi %s747_s20, %s21_s20   ;;  %s699_s19 = sphi %s745_s19, %s1000_s19   ;;  %s695_s18 = sphi %s743_s18, %s999_s18   ;;  %s691_s17 = sphi %s741_s17, %s998_s17   ;;  %s687_s16 = sphi %s739_s16, %s997_s16   ;;  %s683_s15 = sphi %s737_s15, %s996_s15  }
   0x8   : > { %p55_p0 = scmp.ne.s32.totalorder %s687_s16, %s683_s15  ;;  %p771_p1 = scmp.eq.s32.totalorder %s440_s21, 0 }
   0x9   : > { %p775_p2 = scmp.eq.s32.totalorder %s440_s21, 1  ;;  %p155_p3 = scmp.eq.s32.totalorder %s441_s22, 1 }
   0xa   : > { %s981_s23 = scalar_select %p771_p1, 1, 0 }
   0xb   : > { %s982_s24 = scalar_select %p775_p2, 1, 0 }
   0xc   : > { %p781_p4 = por %p771_p1, %p55_p0  ;;  %p442_p5 = scmp.ge.s32.totalorder %s703_s20, 1 }
   0xd   : > { %p786_p6 = por %p155_p3, %p55_p0  ;;  %p162_p7 = scmp.lt.s32.totalorder %s703_s20, 3 }
   0xe   : > { %s983_s25 = scalar_select %p781_p4, 1, 0 }
   0xf   : > { %s984_s26 = scalar_select %p786_p6, 1, 0 }
  0x10   : > { %p791_p8 = pnand %p442_p5, %p162_p7  ;;  %s705_s28 = smov [#allocation5]  }
  0x11   : > { %s177_s29 = sshll.u32 %s705_s28, 4  ;;  %s30_s5 = sadd.s32 1, %s699_s19  ;;  %s178_s29 = int_to_ptr.vmem [resolvable:$true] %s177_s29 }
  0x12   : > { %s985_s27 = scalar_select %p791_p8, 1, 0 }
  0x13   : > { %p486_p9 = pneg %p791_p8  ;;  %s559_s8 = scalar_lea.hbm %s973_s1, 128 }
  0x14   : > { %p560_p12 = scmp.ne.s32.totalorder %s973_s1, %s559_s8  ;;  %p566_p5 = scmp.lt.u32.totalorder %s559_s8, %s973_s1 }
  0x15   : > { %p800_p11 = pnand %p486_p9, %p771_p1 }
  0x17   : > { %p561_p13 = pneg %p800_p11 }
  0x19   : > { %p562_p0 = pnand %p561_p13, %p560_p12 }
  0x1b   : > { %p563_p3 = pneg %p562_p0 }
  0x1d   : > { %p568_p7 = pnand %p566_p5, %p563_p3 }
  0x1f   : > { %571 = shalt.err (!%p568_p7)
}
  0x20   : > { %s572_s13 = scalar_lea.vmem %s178_s29, 128  ;;  %p580_p1 = scmp.lt.s32.totalorder %s178_s29, %s178_s29 }
  0x21   : > { %p573_p9 = scmp.ne.s32.totalorder %s178_s29, %s572_s13  ;;  %p581_p4 = scmp.lt.s32.totalorder %s572_s13, %s572_s13 }
  0x23   : > { %p575_p10 = pnand %p573_p9, %p561_p13  ;;  %p582_p8 = por %p581_p4, %p580_p1 }
  0x25   : > { %p576_p6 = pneg %p575_p10 }
  0x27   : > { %p583_p2 = pnand %p582_p8, %p576_p6 }
  0x29   : > { %586 = shalt.err (!%p583_p2)
}
  0x2a   : > { %s706_s14 = smov 64   ;;  %s707_s21 = smov 4  }
  0x2b   : > { %489 = dma.hbm_to_vmem [thread:$0]  (!%p800_p11), %s973_s1, 128, %s178_s29, [#allocation6], %s706_s14, %s706_s14, %s707_s21  }
  0x2c   : > { %p31_p1 = scmp.ge.s32.totalorder %s30_s5, 2  ;;  %s42_s6 = sadd.s32 1, %s691_s17 }
  0x2d   : > { %p49_p2 = scmp.ne.s32.totalorder %s691_s17, %s687_s16  ;;  %p50_p4 = scmp.eq.s32.totalorder %s703_s20, 0 }
  0x2e   : > { %s1002_s5 = smov (%p31_p1, %s30_s5), 0  ;;  %p988_p8 = scmp.ne.s32.totalorder %s982_s24, 0 }
  0x2f   : > { %p830_p6 = por %p50_p4, %p49_p2  ;;  %s37_s8 = ssub.s32 %s699_s19, %s1002_s5 }
  0x30   : > { %p836_p10 = por %p988_p8, %p49_p2  ;;  %p499_p12 = scmp.lt.s32.totalorder %s703_s20, 2 }
  0x31   : > { %p40_p11 = scmp.eq.s32.totalorder %s37_s8, 0  ;;  %s197_s29 = sand.u32 1, %s691_s17  }
  0x32   : > { %s445_s9 = sshll.u32 %s197_s29, 3  ;;  %s461_s11 = sshll.u32 %s699_s19, 7 }
  0x33   : > { %s845_s10 = scalar_select %p40_p11, %s691_s17, %s42_s6  }
  0x34   : > { %s851_s22 = scalar_lea.hbm %s972_s0, %s461_s11  ;;  %s201_s24 = scalar_lea.vmem [#allocation2], %s445_s9 }
  0x35   : > { %s210_s28 = sshll.u32 %s201_s24, 4  ;;  %p857_p13 = pnand %p499_p12, %p830_p6  ;;  %s853_s28 = int_to_ptr.vmem [resolvable:$true] %s210_s28 }
  0x36   : > { %s861_s6 = scalar_lea.sflag [#allocation3], %s197_s29  ;;  %s587_s12 = scalar_lea.hbm %s851_s22, 128 }
  0x37   : > { %p588_p0 = scmp.ne.s32.totalorder %s851_s22, %s587_s12  ;;  %p589_p3 = pneg %p857_p13 }
  0x38   : > { %s592_s7 = scalar_lea.hbm %s972_s0, 256  ;;  %p593_p9 = scmp.lt.u32.totalorder %s851_s22, %s972_s0 }
  0x39   : > { %p590_p5 = pnand %p589_p3, %p588_p0  ;;  %p594_p1 = scmp.lt.u32.totalorder %s592_s7, %s587_s12 }
  0x3a   : > { %p596_p4 = scmp.lt.u32.totalorder %s587_s12, %s851_s22 }
  0x3b   : > { %p591_p7 = pneg %p590_p5  ;;  %p595_p2 = por %p594_p1, %p593_p9 }
  0x3d   : > { %p597_p6 = por %p596_p4, %p595_p2 }
  0x3f   : > { %p598_p8 = pnand %p597_p6, %p591_p7 }
  0x41   : > { %601 = shalt.err (!%p598_p8)
}
  0x42   : > { %s602_s29 = scalar_lea.vmem %s853_s28, 128  ;;  %s708_s9 = smov [#allocation2]  }
  0x43   : > { %p603_p12 = scmp.ne.s32.totalorder %s853_s28, %s602_s29  ;;  %s607_s11 = sshll.u32 %s708_s9, 4  ;;  %s608_s11 = int_to_ptr.vmem [resolvable:$false] %s607_s11 }
  0x44   : > { %s609_s13 = scalar_lea.vmem %s608_s11, 256  ;;  %p610_p5 = scmp.lt.s32.totalorder %s853_s28, %s608_s11 }
  0x45   : > { %p605_p11 = pnand %p603_p12, %p589_p3  ;;  %p611_p9 = scmp.lt.s32.totalorder %s609_s13, %s602_s29 }
  0x47   : > { %p606_p0 = pneg %p605_p11  ;;  %p612_p1 = por %p611_p9, %p610_p5 }
  0x49   : > { %p613_p2 = pnand %p612_p1, %p606_p0 }
  0x4b   : > { %616 = shalt.err (!%p613_p2)
}
  0x4c   : > { %493 = dma.hbm_to_vmem [thread:$0]  (!%p857_p13), %s851_s22, 128, %s853_s28, %s861_s6, %s706_s14, %s706_s14, %s707_s21  }
  0x4d   : > { %p991_p3 = scmp.ne.s32.totalorder %s985_s27, 0 }
  0x4e   : > { %s895_s12 = sand.u32 (!%p991_p3), 1, %s687_s16   ;;  %p992_p7 = scmp.ne.s32.totalorder (!%p991_p3), %s983_s25, 0 }
  0x4f   : > { %222 = sbr.rel (%p991_p3) target bundleno = 283 (0x11b), region = 36  ;;  %s449_s7 = sshll.u32 (!%p991_p3), %s895_s12, 3 }
  0x50   : > { %s225_s24 = scalar_lea.sflag (!%p991_p3), [#allocation3], %s895_s12  ;;  %s228_s8 = scalar_lea.vmem (!%p991_p3), [#allocation2], %s449_s7 }
  0x56   : > { %670 = dma.done.wait (%p992_p7), %s225_s24, 128  }
  0x57   : > { %672 = vsyncadd (%p992_p7), %s225_s24, 4294967168  ;;  %p993_p13 = scmp.ne.s32.totalorder %s981_s23, 0 }
  0x59   : > { %674 = dma.done.wait (%p993_p13), [#allocation6], 128  }
  0x5a   : > { %676 = vsyncadd (%p993_p13), [#allocation6], 4294967168  ;;  %v466_v0 = vld [vmem:[%s228_s8] sm:$0xff]   ;;  %v470_v27 = vld [vmem:[#allocation5] sm:$0xff]   ;;  %s464_s21 = sshll.u32 %s695_s18, 7  ;;  %s256_s22 = scalar_lea.vmem [#allocation7], %s449_s7 }
  0x5b   : > { %v467_v1 = vunpack.c.l.bf16 %v466_v0  ;;  %v468_v2 = vunpack.c.h.bf16 %v466_v0  ;;  %v452_v21 = vld [vmem:[%s974_s2] ss:$0 sm:$0xff]  ;;  %v471_v31 = vunpack.c.l.bf16 %v470_v27  ;;  %v472_v32 = vunpack.c.h.bf16 %v470_v27  ;;  %s341_s28 = sshll.u32 %s256_s22, 4  ;;  %s921_s9 = scalar_lea.hbm %s976_s4, %s464_s21  ;;  %s923_s28 = int_to_ptr.vmem [resolvable:$true] %s341_s28 }
  0x5c   : > { %v453_v26 = vld [vmem:[%s975_s3] ss:$0 sm:$0xff]  ;;  %s326_s11 = scalar_lea.sflag [#allocation4], %s895_s12  ;;  %s617_s13 = scalar_lea.vmem %s923_s28, 128 }
  0x5d   : > { %264 = vadd.xlane.f32.xlu0 %v467_v1  ;;  %v271_v3 = vmul.f32 %v467_v1, %v467_v1  ;;  %v272_v4 = vmul.f32 %v468_v2, %v468_v2  ;;  %p618_p4 = scmp.ne.s32.totalorder %s923_s28, %s617_s13  ;;  %s709_s18 = smov [#allocation7]  }
  0x5e   : > { %s621_s7 = sshll.u32 %s709_s18, 4  ;;  %s622_s7 = int_to_ptr.vmem [resolvable:$false] %s621_s7 }
  0x5f   : > { %273 = vadd.xlane.f32.xlu1 %v271_v3  ;;  %p619_p6 = pnand %p618_p4, %p836_p10  ;;  %s623_s24 = scalar_lea.vmem %s622_s7, 256 }
  0x60   : > { %p624_p12 = scmp.lt.s32.totalorder %s923_s28, %s622_s7  ;;  %p625_p11 = scmp.lt.s32.totalorder %s623_s24, %s617_s13 }
  0x61   : > { %266 = vadd.xlane.f32.xlu0 %v468_v2  ;;  %p620_p8 = pneg %p619_p6 }
  0x62   : > { %p626_p0 = por %p625_p11, %p624_p12 }
  0x63   : > { %275 = vadd.xlane.f32.xlu1 %v272_v4 }
  0x64   : > { %p627_p5 = pnand %p626_p0, %p620_p8 }
  0xea   : > { %v265_v5 = vpop.xlane.xlu0 %264 }
  0xeb   : > { %v269_v6 = vmul.f32 0.0078125, %v265_v5 }
  0xec   : > { %v274_v7 = vpop.xlane.xlu1 %273 }
  0xed   : > { %v279_v8 = vmul.f32 %v269_v6, %v269_v6  ;;  %v277_v9 = vmul.f32 0.0078125, %v274_v7  ;;  %v293_v19 = vsub.f32 %v467_v1, %v269_v6 }
  0xee   : > { %v267_v10 = vpop.xlane.xlu0 %266 }
  0xef   : > { %v281_v11 = vsub.f32 %v277_v9, %v279_v8  ;;  %v270_v12 = vmul.f32 0.0078125, %v267_v10 }
  0xf0   : > { %v276_v13 = vpop.xlane.xlu1 %275 }
  0xf1   : > { %v283_v14 = vadd.f32 1e-05, %v281_v11  ;;  %v280_v15 = vmul.f32 %v270_v12, %v270_v12  ;;  %v278_v16 = vmul.f32 0.0078125, %v276_v13  ;;  %v294_v24 = vsub.f32 %v468_v2, %v270_v12 }
  0xf3   : > { %555 = vrsqrt.f32 %v283_v14  ;;  %v282_v17 = vsub.f32 %v278_v16, %v280_v15 }
  0xf5   : > { %v284_v18 = vadd.f32 1e-05, %v282_v17 }
  0xf7   : > { %557 = vrsqrt.f32 %v284_v18 }
  0xfd   : > { %v556_v20 = vpop.eup %555 }
  0xfe   : > { %v295_v22 = vmul.f32 %v556_v20, %v293_v19 }
 0x100   : > { %v303_v23 = vmul.f32 %v452_v21, %v295_v22 }
 0x101   : > { %v558_v25 = vpop.eup %557 }
 0x102   : > { %v296_v28 = vmul.f32 %v558_v25, %v294_v24  ;;  %v311_v29 = vadd.f32 %v453_v26, %v303_v23 }
 0x104   : > { %v304_v30 = vmul.f32 %v452_v21, %v296_v28  ;;  %v313_v34 = vadd.f32 %v471_v31, %v311_v29 }
 0x106   : > { %v312_v33 = vadd.f32 %v453_v26, %v304_v30 }
 0x108   : > { %v314_v35 = vadd.f32 %v472_v32, %v312_v33 }
 0x10a   : > { %v476_v36 = vpack.c.bf16 %v314_v35, %v313_v34 }
 0x10c   : > { %477 = vst [vmem:[%s256_s22] sm:$0xff] %v476_v36  }
 0x10d   : > { %630 = shalt.err (!%p627_p5)
}
 0x10e   : > { %s631_s8 = scalar_lea.hbm %s921_s9, 128  ;;  %s635_s27 = scalar_lea.hbm %s976_s4, 256 }
 0x10f   : > { %p632_p9 = scmp.ne.s32.totalorder %s921_s9, %s631_s8  ;;  %p636_p3 = scmp.lt.u32.totalorder %s921_s9, %s976_s4 }
 0x110   : > { %p637_p7 = scmp.lt.u32.totalorder %s635_s27, %s631_s8  ;;  %p639_p4 = scmp.lt.u32.totalorder %s631_s8, %s921_s9 }
 0x111   : > { %p633_p1 = pnand %p632_p9, %p836_p10 }
 0x112   : > { %p638_p13 = por %p637_p7, %p636_p3 }
 0x113   : > { %p634_p2 = pneg %p633_p1 }
 0x114   : > { %p640_p6 = por %p639_p4, %p638_p13 }
 0x116   : > { %p641_p8 = pnand %p640_p6, %p634_p2 }
 0x118   : > { %644 = shalt.err (!%p641_p8)
}
 0x119   : > { %s710_s22 = smov 64   ;;  %s711_s6 = smov 4  }
 0x11a   : > { %484 = dma.vmem_to_hbm [thread:$0]  (%p836_p10), %s923_s28, 128, %s921_s9, %s326_s11, %s710_s22, %s710_s22, %s711_s6  }
 0x11b PF: > { %s356_s29 = sand.u32 1, %s683_s15   ;;  %p994_p12 = scmp.ne.s32.totalorder %s984_s26, 0 }
 0x11c   : > { %p995_p11 = scmp.ge.s32.totalorder %s703_s20, 2  ;;  %s357_s13 = scalar_lea.sflag [#allocation4], %s356_s29 }
 0x11e   : > { %p495_p0 = pnand %p995_p11, %p994_p12 }
 0x120   : > { %678 = dma.done.wait (!%p495_p0), %s357_s13, 128  }
 0x121   : > { %680 = vsyncadd (!%p495_p0), %s357_s13, 4294967168  ;;  %s21_s20 = sadd.s32 1, %s703_s20   ;;  %s996_s15 = smov %s687_s16 }
 0x122   : > { %p18_p5 = scmp.ge.s32.totalorder %s21_s20, 4   ;;  %s997_s16 = smov %s691_s17 }
 0x123   : > { %s998_s17 = smov %s845_s10  ;;  %s999_s18 = smov %s699_s19 }
 0x124   : > { %s1000_s19 = smov %s1002_s5  ;;  %20 = sbr.rel (!%p18_p5) target bundleno = 7 (0x7), region = 86 }
 0x12b   :  { %362 = vsyncpa [#allocation3], 1 }
 0x12c   :  { %364 = vsyncpa [#allocation3 + $0x1], 1 }
 0x12d   :  { %365 = vsyncpa [#allocation6], 1 }
 0x12e   :  { %366 = vsyncpa [#allocation4], 1 }
 0x12f   :  { %368 = vsyncpa [#allocation4 + $0x1], 1 }

</bundles_post_ra>
